<compile_context>
chip_gen: v7x
topology: tpu7x:2x2x1
jax: 0.10.0
libtpu: 0.0.40
codegen_flags: <defaults>
</compile_context>

<pallas_src>
import jax
import jax.numpy as jnp
from jax.experimental import pallas as pl
from jax.experimental.pallas import tpu as pltpu


def _round_up(x, m):
    return ((x + m - 1) // m) * m


def _cdiv(a, b):
    return -(-a // b)


def _spectral_normalize(w, key, n_power_iterations=1, eps=1e-12):
    """PyTorch-style spectral norm for weight w of shape (out, in), in f32."""
    out_dim, _ = w.shape
    u = jax.random.normal(key, (out_dim,), dtype=jnp.float32)
    u = u / (jnp.linalg.norm(u) + eps)
    v = None
    for _ in range(n_power_iterations):
        v = w.T @ u
        v = v / (jnp.linalg.norm(v) + eps)
        u = w @ v
        u = u / (jnp.linalg.norm(u) + eps)
    sigma = u @ (w @ v)
    return w / sigma


# ---------------------------------------------------------------------------
# Kernels
# ---------------------------------------------------------------------------

def _resnet_fc_kernel_shortcut(x_ref, w0_ref, b0_ref, w1_ref, ws_ref, b1_ref,
                               o_ref):
    """size_in != size_out: out = relu(relu(x)@W0 + b0)@W1 + x@Ws + b1."""
    x = x_ref[...]                                        # native dtype
    h = jnp.maximum(x, 0).astype(jnp.bfloat16)            # relu(x) -> MXU operand
    net = jnp.dot(h, w0_ref[...],
                  preferred_element_type=jnp.float32) + b0_ref[...]
    g = jnp.maximum(net, 0.0).astype(jnp.bfloat16)        # relu(fc_0)
    out = jnp.dot(g, w1_ref[...], preferred_element_type=jnp.float32)
    out = out + jnp.dot(x.astype(jnp.bfloat16), ws_ref[...],
                        preferred_element_type=jnp.float32)
    out = out + b1_ref[...]
    o_ref[...] = out.astype(o_ref.dtype)


def _resnet_fc_kernel_identity(x_ref, w0_ref, b0_ref, w1_ref, b1_ref, o_ref):
    """size_in == size_out: identity shortcut; residual add kept in f32."""
    x = x_ref[...]
    h = jnp.maximum(x, 0).astype(jnp.bfloat16)
    net = jnp.dot(h, w0_ref[...],
                  preferred_element_type=jnp.float32) + b0_ref[...]
    g = jnp.maximum(net, 0.0).astype(jnp.bfloat16)
    dx = jnp.dot(g, w1_ref[...],
                 preferred_element_type=jnp.float32) + b1_ref[...]
    o_ref[...] = (x.astype(jnp.float32) + dx).astype(o_ref.dtype)


# ---------------------------------------------------------------------------
# Parameter preparation (bf16 weights in (in, out) layout; no padding needed)
# ---------------------------------------------------------------------------

def make_resnet_fc_params(w0_t, b0, w1_t, b1, ws_t=None):
    """Build kernel params from PyTorch-layout (out, in) weights.

    w0_t: (size_h, size_in); w1_t: (size_out, size_h);
    ws_t: (size_out, size_in) or None when size_in == size_out.
    Weights are assumed already spectral-normalized (f32).
    """
    size_h, size_in = w0_t.shape
    size_out = w1_t.shape[0]
    if ws_t is None:
        assert size_in == size_out, "identity shortcut needs size_in == size_out"

    params = dict(
        size_in=size_in, size_h=size_h, size_out=size_out,
        w0=jnp.asarray(w0_t, jnp.float32).T.astype(jnp.bfloat16),   # (in, h)
        b0=jnp.asarray(b0, jnp.float32).reshape(1, size_h),
        w1=jnp.asarray(w1_t, jnp.float32).T.astype(jnp.bfloat16),   # (h, out)
        b1=jnp.asarray(b1, jnp.float32).reshape(1, size_out),
    )
    if ws_t is not None:
        params["ws"] = jnp.asarray(ws_t, jnp.float32).T.astype(jnp.bfloat16)
    return params


# ---------------------------------------------------------------------------
# Tile selection / VMEM accounting
# ---------------------------------------------------------------------------

def _vmem_limit_bytes():
    """Generation-aware scoped-VMEM limit (~40 MiB on v7x, ~80 MiB on v5e/v6e)."""
    try:
        cap = int(pltpu.get_tpu_info().vmem_capacity_bytes)
    except Exception:
        cap = 64 * 1024 * 1024
    limit = min(cap * 5 // 8, 100 * 1024 * 1024)
    return int(max(limit, 32 * 1024 * 1024))


def _select_tm(tm_req, M, per_row_bytes, budget_bytes):
    tm = min(int(tm_req), _round_up(M, 8))
    if M >= 64:
        # v7x megacore: keep at least 2 (balanced) programs on the parallel axis.
        tm = min(tm, _round_up(_cdiv(M, 2), 8))
    while tm > 8 and tm * per_row_bytes > budget_bytes:
        tm //= 2
    tm = max(8, (tm // 8) * 8)
    # Prefer 256-row multiples (v6e/v7x MXU is 256x256) when that does not add
    # a grid step.
    if tm > 256 and tm % 256 != 0:
        tm_rounded = (tm // 256) * 256
        if _cdiv(M, tm_rounded) == _cdiv(M, tm):
            tm = tm_rounded
    return tm


# ---------------------------------------------------------------------------
# Wrapper
# ---------------------------------------------------------------------------

# Cached capability flag: does this JAX accept pipeline_mode=pl.Buffered(1)?
_SINGLE_BUFFER_WEIGHTS_OK = None


def resnet_block_fc(x, params, *, tm=1024, out_dtype=None):
    """Apply ResnetBlockFC.forward to x of shape (..., size_in) -> (..., size_out)."""
    global _SINGLE_BUFFER_WEIGHTS_OK

    size_in = params["size_in"]
    size_h = params["size_h"]
    size_out = params["size_out"]
    assert x.shape[-1] == size_in

    lead = x.shape[:-1]
    x2d = x.reshape(-1, size_in)          # metadata-only; dtype kept (f32 or bf16)
    M = x2d.shape[0]
    out_dtype = x.dtype if out_dtype is None else out_dtype
    has_shortcut = "ws" in params

    x_bpe = jnp.dtype(x2d.dtype).itemsize
    o_bpe = jnp.dtype(out_dtype).itemsize

    # --- VMEM accounting (worst case: double-buffered weights) -------------
    w_bytes = params["w0"].size * 2 + params["w1"].size * 2
    if has_shortcut:
        w_bytes += params["ws"].size * 2
    bias_bytes = (size_h + size_out) * 4
    per_row = (2 * size_in * x_bpe            # x tile (double-buffered)
               + 2 * size_out * o_bpe         # out tile (double-buffered)
               + 2 * size_in                  # h  (bf16)
               + 4 * size_h + 2 * size_h      # net (f32) + g (bf16)
               + 2 * 4 * size_out             # f32 accumulators
               + (2 * size_in if has_shortcut else 0))   # x bf16 for Ws dot
    vmem_limit = _vmem_limit_bytes()
    budget = vmem_limit * 4 // 5 - 2 * (w_bytes + bias_bytes)

    tm_eff = _select_tm(tm, M, per_row, budget)
    grid = (_cdiv(M, tm_eff),)

    x_spec = pl.BlockSpec((tm_eff, size_in), lambda i: (i, 0))
    out_spec = pl.BlockSpec((tm_eff, size_out), lambda i: (i, 0))

    flops = 2 * M * (size_in * size_h + size_h * size_out
                     + (size_in * size_out if has_shortcut else 0))
    bytes_accessed = (M * size_in * x_bpe + M * size_out * o_bpe
                      + w_bytes + bias_bytes)

    def _run(single_buffer_weights):
        def inv_spec(shape):
            # Grid-invariant operand: resident across all grid steps.
            if single_buffer_weights:
                return pl.BlockSpec(shape, lambda i: (0, 0),
                                    pipeline_mode=pl.Buffered(1))
            return pl.BlockSpec(shape, lambda i: (0, 0))

        if has_shortcut:
            kernel = _resnet_fc_kernel_shortcut
            in_specs = [x_spec,
                        inv_spec((size_in, size_h)), inv_spec((1, size_h)),
                        inv_spec((size_h, size_out)), inv_spec((size_in, size_out)),
                        inv_spec((1, size_out))]
            args = (x2d, params["w0"], params["b0"], params["w1"],
                    params["ws"], params["b1"])
        else:
            kernel = _resnet_fc_kernel_identity
            in_specs = [x_spec,
                        inv_spec((size_in, size_h)), inv_spec((1, size_h)),
                        inv_spec((size_h, size_out)), inv_spec((1, size_out))]
            args = (x2d, params["w0"], params["b0"], params["w1"], params["b1"])

        return pl.pallas_call(
            kernel,
            out_shape=jax.ShapeDtypeStruct((M, size_out), out_dtype),
            grid_spec=pl.GridSpec(grid=grid, in_specs=in_specs,
                                  out_specs=out_spec),
            compiler_params=pltpu.CompilerParams(
                dimension_semantics=("parallel",),
                vmem_limit_bytes=vmem_limit,
            ),
            cost_estimate=pl.CostEstimate(
                flops=flops, transcendentals=0, bytes_accessed=bytes_accessed),
        )(*args)

    if _SINGLE_BUFFER_WEIGHTS_OK is None:
        try:
            out2d = _run(True)
            jax.block_until_ready(out2d)      # force compile once (eager only)
            _SINGLE_BUFFER_WEIGHTS_OK = True
        except Exception:
            _SINGLE_BUFFER_WEIGHTS_OK = False
            out2d = _run(False)
    else:
        out2d = _run(_SINGLE_BUFFER_WEIGHTS_OK)

    return out2d.reshape(*lead, size_out)


# ---------------------------------------------------------------------------
# Demo / correctness check
# ---------------------------------------------------------------------------

if __name__ == "__main__":
    key = jax.random.PRNGKey(0)
    batch, seq = 2, 8                       # M = 16 rows
    size_in, size_h, size_out = 32, 32, 64  # size_out != size_in -> linear shortcut

    ks = jax.random.split(key, 12)
    x = jax.random.normal(ks[0], (batch, seq, size_in), jnp.float32)

    # Deterministic synthetic parameters (PyTorch layout: weight is (out, in)).
    w0_t = jax.random.normal(ks[1], (size_h, size_in), jnp.float32) * 0.1
    b0 = jax.random.normal(ks[2], (size_h,), jnp.float32) * 0.1
    w1_t = jax.random.normal(ks[3], (size_out, size_h), jnp.float32) * 0.1
    b1 = jax.random.normal(ks[4], (size_out,), jnp.float32) * 0.1
    ws_t = jax.random.normal(ks[5], (size_out, size_in), jnp.float32) * 0.1

    # spectral_norm wrapper on each Linear weight (deterministic, f32).
    w0_t = _spectral_normalize(w0_t, ks[6])
    w1_t = _spectral_normalize(w1_t, ks[7])
    ws_t = _spectral_normalize(ws_t, ks[8])

    def bf(v):
        return v.astype(jnp.bfloat16).astype(jnp.float32)

    # --- shortcut path (size_in != size_out) -------------------------------
    params = make_resnet_fc_params(w0_t, b0, w1_t, b1, ws_t)
    out = resnet_block_fc(x, params)
    jax.block_until_ready(out)
    assert out.shape == (batch, seq, size_out)

    # Reference mirroring the kernel's bf16 MXU operands (f32 accumulation).
    def ref_mirror(x):
        h = jnp.maximum(x, 0.0)
        net = bf(h) @ bf(w0_t.T) + b0
        g = jnp.maximum(net, 0.0)
        dx = bf(g) @ bf(w1_t.T) + b1
        xs = bf(x) @ bf(ws_t.T)
        return xs + dx

    assert jnp.allclose(out, ref_mirror(x), atol=5e-3, rtol=5e-3), \
        "mismatch vs bf16-mirrored reference"

    # Pure-f32 semantic reference (loose tolerance covers bf16 quantization).
    def ref_f32(x):
        net = jnp.maximum(x, 0.0) @ w0_t.T + b0
        dx = jnp.maximum(net, 0.0) @ w1_t.T + b1
        return x @ ws_t.T + dx

    assert jnp.allclose(out, ref_f32(x), atol=3e-2, rtol=3e-2), \
        "mismatch vs f32 reference"

    # --- identity-shortcut path (size_in == size_out) ----------------------
    w1b_t = _spectral_normalize(
        jax.random.normal(ks[9], (size_in, size_h), jnp.float32) * 0.1, ks[10])
    b1b = jax.random.normal(ks[11], (size_in,), jnp.float32) * 0.1
    params_id = make_resnet_fc_params(w0_t, b0, w1b_t, b1b, None)
    out_id = resnet_block_fc(x, params_id)
    jax.block_until_ready(out_id)
    assert out_id.shape == (batch, seq, size_in)

    def ref_id(x):
        h = jnp.maximum(x, 0.0)
        net = bf(h) @ bf(w0_t.T) + b0
        g = jnp.maximum(net, 0.0)
        dx = bf(g) @ bf(w1b_t.T) + b1b
        return x + dx

    assert jnp.allclose(out_id, ref_id(x), atol=5e-3, rtol=5e-3), \
        "mismatch vs identity-path reference"

    print("KERNEL_OK")
</pallas_src>

<mosaic_0001>
module attributes {stable_mosaic.version = 11 : i64} {
  func.func @_resnet_fc_kernel_shortcut(%arg0: i32, %arg1: memref<16x32xf32, #tpu.memory_space<vmem>>, %arg2: memref<32x32xbf16, #tpu.memory_space<vmem>>, %arg3: memref<1x32xf32, #tpu.memory_space<vmem>>, %arg4: memref<32x64xbf16, #tpu.memory_space<vmem>>, %arg5: memref<32x64xbf16, #tpu.memory_space<vmem>>, %arg6: memref<1x64xf32, #tpu.memory_space<vmem>>, %arg7: memref<16x64xf32, #tpu.memory_space<vmem>>) attributes {dimension_semantics = [#tpu.dimension_semantics<parallel>], iteration_bounds = array<i64: 1>, scalar_prefetch = 0 : i64, scratch_operands = 0 : i64, tpu.core_type = #tpu.core_type<tc>, window_params = [{transform_indices = @transform_0, window_bounds = array<i64: 16, 32>}, {pipeline_mode = #tpu.pipeline_mode<synchronous>, transform_indices = @transform_1, window_bounds = array<i64: 32, 32>}, {pipeline_mode = #tpu.pipeline_mode<synchronous>, transform_indices = @transform_2, window_bounds = array<i64: 1, 32>}, {pipeline_mode = #tpu.pipeline_mode<synchronous>, transform_indices = @transform_3, window_bounds = array<i64: 32, 64>}, {pipeline_mode = #tpu.pipeline_mode<synchronous>, transform_indices = @transform_4, window_bounds = array<i64: 32, 64>}, {pipeline_mode = #tpu.pipeline_mode<synchronous>, transform_indices = @transform_5, window_bounds = array<i64: 1, 64>}, {transform_indices = @transform_6, window_bounds = array<i64: 16, 64>}]} {
    %c0 = arith.constant 0 : index
    %c0_0 = arith.constant 0 : index
    %0 = vector.load %arg1[%c0, %c0_0] : memref<16x32xf32, #tpu.memory_space<vmem>>, vector<16x32xf32>
    %cst = arith.constant 0.000000e+00 : f32
    %1 = vector.broadcast %cst : f32 to vector<16x32xf32>
    %2 = arith.maximumf %0, %1 : vector<16x32xf32>
    %3 = arith.truncf %2 : vector<16x32xf32> to vector<16x32xbf16>
    %c0_1 = arith.constant 0 : index
    %c0_2 = arith.constant 0 : index
    %4 = vector.load %arg2[%c0_1, %c0_2] : memref<32x32xbf16, #tpu.memory_space<vmem>>, vector<32x32xbf16>
    %cst_3 = arith.constant dense<0.000000e+00> : vector<16x32xf32>
    %5 = tpu.matmul %3, %4, %cst_3 {dimension_numbers = #tpu.dot_dimension_numbers<[1], [0], [0], [1], [0, 0, 1, 1], [], []>} : vector<16x32xbf16>, vector<32x32xbf16>, vector<16x32xf32> -> vector<16x32xf32>
    %c0_4 = arith.constant 0 : index
    %c0_5 = arith.constant 0 : index
    %6 = vector.load %arg3[%c0_4, %c0_5] : memref<1x32xf32, #tpu.memory_space<vmem>>, vector<1x32xf32>
    %7 = vector.broadcast %6 : vector<1x32xf32> to vector<16x32xf32>
    %8 = arith.addf %5, %7 : vector<16x32xf32>
    %cst_6 = arith.constant 0.000000e+00 : f32
    %9 = vector.broadcast %cst_6 : f32 to vector<16x32xf32>
    %10 = arith.maximumf %8, %9 : vector<16x32xf32>
    %11 = arith.truncf %10 : vector<16x32xf32> to vector<16x32xbf16>
    %c0_7 = arith.constant 0 : index
    %c0_8 = arith.constant 0 : index
    %12 = vector.load %arg4[%c0_7, %c0_8] : memref<32x64xbf16, #tpu.memory_space<vmem>>, vector<32x64xbf16>
    %cst_9 = arith.constant dense<0.000000e+00> : vector<16x64xf32>
    %13 = tpu.matmul %11, %12, %cst_9 {dimension_numbers = #tpu.dot_dimension_numbers<[1], [0], [0], [1], [0, 0, 1, 1], [], []>} : vector<16x32xbf16>, vector<32x64xbf16>, vector<16x64xf32> -> vector<16x64xf32>
    %14 = arith.truncf %0 : vector<16x32xf32> to vector<16x32xbf16>
    %c0_10 = arith.constant 0 : index
    %c0_11 = arith.constant 0 : index
    %15 = vector.load %arg5[%c0_10, %c0_11] : memref<32x64xbf16, #tpu.memory_space<vmem>>, vector<32x64xbf16>
    %cst_12 = arith.constant dense<0.000000e+00> : vector<16x64xf32>
    %16 = tpu.matmul %14, %15, %cst_12 {dimension_numbers = #tpu.dot_dimension_numbers<[1], [0], [0], [1], [0, 0, 1, 1], [], []>} : vector<16x32xbf16>, vector<32x64xbf16>, vector<16x64xf32> -> vector<16x64xf32>
    %17 = arith.addf %13, %16 : vector<16x64xf32>
    %c0_13 = arith.constant 0 : index
    %c0_14 = arith.constant 0 : index
    %18 = vector.load %arg6[%c0_13, %c0_14] : memref<1x64xf32, #tpu.memory_space<vmem>>, vector<1x64xf32>
    %19 = vector.broadcast %18 : vector<1x64xf32> to vector<16x64xf32>
    %20 = arith.addf %17, %19 : vector<16x64xf32>
    %c0_15 = arith.constant 0 : index
    %c0_16 = arith.constant 0 : index
    %21 = vector.load %arg7[%c0_15, %c0_16] : memref<16x64xf32, #tpu.memory_space<vmem>>, vector<16x64xf32>
    tpu.vector_store %arg7[%c0_15, %c0_16], %20 {strides = array<i32>} : memref<16x64xf32, #tpu.memory_space<vmem>>, vector<16x64xf32>,
    return
  }
  func.func @transform_0(%arg0: i32) -> (i32, i32) {
    %c0_i32 = arith.constant 0 : i32
    %c0_i32_0 = arith.constant 0 : i32
    return %arg0, %c0_i32 : i32, i32
  }
  func.func @transform_1(%arg0: i32) -> (i32, i32) {
    %c0_i32 = arith.constant 0 : i32
    %c0_i32_0 = arith.constant 0 : i32
    %c0_i32_1 = arith.constant 0 : i32
    return %c0_i32, %c0_i32_0 : i32, i32
  }
  func.func @transform_2(%arg0: i32) -> (i32, i32) {
    %c0_i32 = arith.constant 0 : i32
    %c0_i32_0 = arith.constant 0 : i32
    %c0_i32_1 = arith.constant 0 : i32
    return %c0_i32, %c0_i32_0 : i32, i32
  }
  func.func @transform_3(%arg0: i32) -> (i32, i32) {
    %c0_i32 = arith.constant 0 : i32
    %c0_i32_0 = arith.constant 0 : i32
    %c0_i32_1 = arith.constant 0 : i32
    return %c0_i32, %c0_i32_0 : i32, i32
  }
  func.func @transform_4(%arg0: i32) -> (i32, i32) {
    %c0_i32 = arith.constant 0 : i32
    %c0_i32_0 = arith.constant 0 : i32
    %c0_i32_1 = arith.constant 0 : i32
    return %c0_i32, %c0_i32_0 : i32, i32
  }
  func.func @transform_5(%arg0: i32) -> (i32, i32) {
    %c0_i32 = arith.constant 0 : i32
    %c0_i32_0 = arith.constant 0 : i32
    %c0_i32_1 = arith.constant 0 : i32
    return %c0_i32, %c0_i32_0 : i32, i32
  }
  func.func @transform_6(%arg0: i32) -> (i32, i32) {
    %c0_i32 = arith.constant 0 : i32
    %c0_i32_0 = arith.constant 0 : i32
    return %arg0, %c0_i32 : i32, i32
  }
}

module attributes {stable_mosaic.version = 11 : i64} {
  func.func @_resnet_fc_kernel_shortcut(%arg0: i32, %arg1: memref<16x32xf32, #tpu.memory_space<vmem>>, %arg2: memref<32x32xbf16, #tpu.memory_space<vmem>>, %arg3: memref<1x32xf32, #tpu.memory_space<vmem>>, %arg4: memref<32x64xbf16, #tpu.memory_space<vmem>>, %arg5: memref<32x64xbf16, #tpu.memory_space<vmem>>, %arg6: memref<1x64xf32, #tpu.memory_space<vmem>>, %arg7: memref<16x64xf32, #tpu.memory_space<vmem>>) attributes {dimension_semantics = [#tpu.dimension_semantics<parallel>], iteration_bounds = array<i64: 1>, scalar_prefetch = 0 : i64, scratch_operands = 0 : i64, tpu.core_type = #tpu.core_type<tc>, window_params = [{transform_indices = @transform_0, window_bounds = array<i64: 16, 32>}, {pipeline_mode = #tpu.pipeline_mode<synchronous>, transform_indices = @transform_1, window_bounds = array<i64: 32, 32>}, {pipeline_mode = #tpu.pipeline_mode<synchronous>, transform_indices = @transform_2, window_bounds = array<i64: 1, 32>}, {pipeline_mode = #tpu.pipeline_mode<synchronous>, transform_indices = @transform_3, window_bounds = array<i64: 32, 64>}, {pipeline_mode = #tpu.pipeline_mode<synchronous>, transform_indices = @transform_4, window_bounds = array<i64: 32, 64>}, {pipeline_mode = #tpu.pipeline_mode<synchronous>, transform_indices = @transform_5, window_bounds = array<i64: 1, 64>}, {transform_indices = @transform_6, window_bounds = array<i64: 16, 64>}]} {
    %c0 = arith.constant 0 : index
    %c0_0 = arith.constant 0 : index
    %0 = vector.load %arg1[%c0, %c0_0] : memref<16x32xf32, #tpu.memory_space<vmem>>, vector<16x32xf32>
    %cst = arith.constant 0.000000e+00 : f32
    %1 = vector.broadcast %cst : f32 to vector<16x32xf32>
    %2 = arith.maximumf %0, %1 : vector<16x32xf32>
    %3 = arith.truncf %2 : vector<16x32xf32> to vector<16x32xbf16>
    %c0_1 = arith.constant 0 : index
    %c0_2 = arith.constant 0 : index
    %4 = vector.load %arg2[%c0_1, %c0_2] : memref<32x32xbf16, #tpu.memory_space<vmem>>, vector<32x32xbf16>
    %cst_3 = arith.constant dense<0.000000e+00> : vector<16x32xf32>
    %5 = tpu.matmul %3, %4, %cst_3 {dimension_numbers = #tpu.dot_dimension_numbers<[1], [0], [0], [1], [0, 0, 1, 1], [], []>} : vector<16x32xbf16>, vector<32x32xbf16>, vector<16x32xf32> -> vector<16x32xf32>
    %c0_4 = arith.constant 0 : index
    %c0_5 = arith.constant 0 : index
    %6 = vector.load %arg3[%c0_4, %c0_5] : memref<1x32xf32, #tpu.memory_space<vmem>>, vector<1x32xf32>
    %7 = vector.broadcast %6 : vector<1x32xf32> to vector<16x32xf32>
    %8 = arith.addf %5, %7 : vector<16x32xf32>
    %cst_6 = arith.constant 0.000000e+00 : f32
    %9 = vector.broadcast %cst_6 : f32 to vector<16x32xf32>
    %10 = arith.maximumf %8, %9 : vector<16x32xf32>
    %11 = arith.truncf %10 : vector<16x32xf32> to vector<16x32xbf16>
    %c0_7 = arith.constant 0 : index
    %c0_8 = arith.constant 0 : index
    %12 = vector.load %arg4[%c0_7, %c0_8] : memref<32x64xbf16, #tpu.memory_space<vmem>>, vector<32x64xbf16>
    %cst_9 = arith.constant dense<0.000000e+00> : vector<16x64xf32>
    %13 = tpu.matmul %11, %12, %cst_9 {dimension_numbers = #tpu.dot_dimension_numbers<[1], [0], [0], [1], [0, 0, 1, 1], [], []>} : vector<16x32xbf16>, vector<32x64xbf16>, vector<16x64xf32> -> vector<16x64xf32>
    %14 = arith.truncf %0 : vector<16x32xf32> to vector<16x32xbf16>
    %c0_10 = arith.constant 0 : index
    %c0_11 = arith.constant 0 : index
    %15 = vector.load %arg5[%c0_10, %c0_11] : memref<32x64xbf16, #tpu.memory_space<vmem>>, vector<32x64xbf16>
    %cst_12 = arith.constant dense<0.000000e+00> : vector<16x64xf32>
    %16 = tpu.matmul %14, %15, %cst_12 {dimension_numbers = #tpu.dot_dimension_numbers<[1], [0], [0], [1], [0, 0, 1, 1], [], []>} : vector<16x32xbf16>, vector<32x64xbf16>, vector<16x64xf32> -> vector<16x64xf32>
    %17 = arith.addf %13, %16 : vector<16x64xf32>
    %c0_13 = arith.constant 0 : index
    %c0_14 = arith.constant 0 : index
    %18 = vector.load %arg6[%c0_13, %c0_14] : memref<1x64xf32, #tpu.memory_space<vmem>>, vector<1x64xf32>
    %19 = vector.broadcast %18 : vector<1x64xf32> to vector<16x64xf32>
    %20 = arith.addf %17, %19 : vector<16x64xf32>
    %c0_15 = arith.constant 0 : index
    %c0_16 = arith.constant 0 : index
    %21 = vector.load %arg7[%c0_15, %c0_16] : memref<16x64xf32, #tpu.memory_space<vmem>>, vector<16x64xf32>
    tpu.vector_store %arg7[%c0_15, %c0_16], %20 {strides = array<i32>} : memref<16x64xf32, #tpu.memory_space<vmem>>, vector<16x64xf32>,
    return
  }
  func.func @transform_0(%arg0: i32) -> (i32, i32) {
    %c0_i32 = arith.constant 0 : i32
    %c0_i32_0 = arith.constant 0 : i32
    return %arg0, %c0_i32 : i32, i32
  }
  func.func @transform_1(%arg0: i32) -> (i32, i32) {
    %c0_i32 = arith.constant 0 : i32
    %c0_i32_0 = arith.constant 0 : i32
    %c0_i32_1 = arith.constant 0 : i32
    return %c0_i32, %c0_i32_0 : i32, i32
  }
  func.func @transform_2(%arg0: i32) -> (i32, i32) {
    %c0_i32 = arith.constant 0 : i32
    %c0_i32_0 = arith.constant 0 : i32
    %c0_i32_1 = arith.constant 0 : i32
    return %c0_i32, %c0_i32_0 : i32, i32
  }
  func.func @transform_3(%arg0: i32) -> (i32, i32) {
    %c0_i32 = arith.constant 0 : i32
    %c0_i32_0 = arith.constant 0 : i32
    %c0_i32_1 = arith.constant 0 : i32
    return %c0_i32, %c0_i32_0 : i32, i32
  }
  func.func @transform_4(%arg0: i32) -> (i32, i32) {
    %c0_i32 = arith.constant 0 : i32
    %c0_i32_0 = arith.constant 0 : i32
    %c0_i32_1 = arith.constant 0 : i32
    return %c0_i32, %c0_i32_0 : i32, i32
  }
  func.func @transform_5(%arg0: i32) -> (i32, i32) {
    %c0_i32 = arith.constant 0 : i32
    %c0_i32_0 = arith.constant 0 : i32
    %c0_i32_1 = arith.constant 0 : i32
    return %c0_i32, %c0_i32_0 : i32, i32
  }
  func.func @transform_6(%arg0: i32) -> (i32, i32) {
    %c0_i32 = arith.constant 0 : i32
    %c0_i32_0 = arith.constant 0 : i32
    return %arg0, %c0_i32 : i32, i32
  }
}

</mosaic_0001>

<bundles_post_ra>
// kernel: tpu_custom_call.1
= control target key start
LH: loop header
LB: loop body
LE: loop exit
PB: predicated region body
PF: predicated region fallthrough
CT: control target
= control target key end

     0   :  { %11 = vsyncpa [#allocation3], 0  ;;  %s627_s0 = inlined_call_operand.hbm [shape: f32[16,32], index: 0, kind: input, shape index: {}]   ;;  %s628_s1 = inlined_call_operand.hbm [shape: bf16[32,32], index: 1, kind: input, shape index: {}]   ;;  %s629_s2 = inlined_call_operand.vmem [shape: f32[1,32], index: 2, kind: input, shape index: {}]   ;;  %s630_s3 = inlined_call_operand.hbm [shape: bf16[32,64], index: 3, kind: input, shape index: {}]   ;;  %s631_s4 = inlined_call_operand.hbm [shape: bf16[32,64], index: 4, kind: input, shape index: {}]   ;;  %s632_s5 = inlined_call_operand.vmem [shape: f32[1,64], index: 5, kind: input, shape index: {}]   ;;  %s633_s6 = inlined_call_operand.hbm [shape: f32[16,64], index: 6, kind: output, shape index: {}]  }
   0x1   :  { %12 = vsyncpa [#allocation6], 0 }
   0x2   :  { %13 = vsyncpa [#allocation9], 0 }
   0x3   :  { %14 = vsyncpa [#allocation4], 0  ;;  %s487_s21 = smov [#allocation5]   ;;  %s369_s25 = scalar_lea.hbm %s628_s1, 256 }
   0x4   :  { %s32_s22 = sshll.u32 %s487_s21, 4  ;;  %p370_p0 = scmp.ne.s32.totalorder %s628_s1, %s369_s25  ;;  %s33_s22 = int_to_ptr.vmem [resolvable:$true] %s32_s22 }
   0x5   :  { %p373_p1 = scmp.lt.u32.totalorder %s369_s25, %s628_s1 }
   0x7   :  { %p375_p2 = pnand %p373_p1, %p370_p0 }
   0x9   :  { %378 = shalt.err (!%p375_p2)
}
   0xa   :  { %s379_s30 = scalar_lea.vmem %s33_s22, 256  ;;  %p384_p4 = scmp.lt.s32.totalorder %s33_s22, %s33_s22 }
   0xb   :  { %p380_p3 = scmp.ne.s32.totalorder %s33_s22, %s379_s30  ;;  %p385_p5 = scmp.lt.s32.totalorder %s379_s30, %s379_s30 }
   0xd   :  { %p386_p6 = por %p385_p5, %p384_p4 }
   0xf   :  { %p387_p7 = pnand %p386_p6, %p380_p3 }
  0x11   :  { %390 = shalt.err (!%p387_p7)
}
  0x12   :  { %s488_s7 = smov 64   ;;  %s489_s8 = smov 4  }
  0x13   :  { %38 = dma.hbm_to_vmem [thread:$0]  %s628_s1, 256, %s33_s22, [#allocation6], %s488_s7, %s488_s7, %s489_s8  }
  0x14   :  { %s490_s11 = smov [#allocation2]   ;;  %s391_s15 = scalar_lea.hbm %s627_s0, 256 }
  0x15   :  { %s20_s12 = sshll.u32 %s490_s11, 4  ;;  %p392_p8 = scmp.ne.s32.totalorder %s627_s0, %s391_s15  ;;  %s21_s12 = int_to_ptr.vmem [resolvable:$true] %s20_s12 }
  0x16   :  { %p395_p9 = scmp.lt.u32.totalorder %s391_s15, %s627_s0 }
  0x18   :  { %p397_p10 = pnand %p395_p9, %p392_p8 }
  0x1a   :  { %400 = shalt.err (!%p397_p10)
}
  0x1b   :  { %s401_s20 = scalar_lea.vmem %s21_s12, 256  ;;  %p406_p12 = scmp.lt.s32.totalorder %s21_s12, %s21_s12 }
  0x1c   :  { %p402_p11 = scmp.ne.s32.totalorder %s21_s12, %s401_s20  ;;  %p407_p13 = scmp.lt.s32.totalorder %s401_s20, %s401_s20 }
  0x1e   :  { %p408_p0 = por %p407_p13, %p406_p12 }
  0x20   :  { %p409_p1 = pnand %p408_p0, %p402_p11 }
  0x22   :  { %412 = shalt.err (!%p409_p1)
}
  0x23   :  { %s491_s1 = smov 128   ;;  %s492_s21 = smov 8  }
  0x24   :  { %26 = dma.hbm_to_vmem [thread:$0]  %s627_s0, 256, %s21_s12, [#allocation3], %s491_s1, %s491_s1, %s492_s21  }
  0x25   :  { %s493_s24 = smov [#allocation7]   ;;  %s494_s26 = smov [#allocation8]  }
  0x26   :  { %s46_s25 = sshll.u32 %s493_s24, 4  ;;  %s58_s27 = sshll.u32 %s494_s26, 4  ;;  %s47_s25 = int_to_ptr.vmem [resolvable:$true] %s46_s25  ;;  %s563_s27 = int_to_ptr.vmem [resolvable:$true] %s58_s27 }
  0x27   :  { %s413_s30 = scalar_lea.hbm %s630_s3, 256 }
  0x28   :  { %p414_p2 = scmp.ne.s32.totalorder %s630_s3, %s413_s30  ;;  %p417_p3 = scmp.lt.u32.totalorder %s413_s30, %s630_s3 }
  0x2a   :  { %p419_p4 = pnand %p417_p3, %p414_p2 }
  0x2c   :  { %422 = shalt.err (!%p419_p4)
}
  0x2d   :  { %s423_s0 = scalar_lea.vmem %s47_s25, 256  ;;  %p428_p6 = scmp.lt.s32.totalorder %s47_s25, %s47_s25 }
  0x2e   :  { %p424_p5 = scmp.ne.s32.totalorder %s47_s25, %s423_s0  ;;  %p429_p7 = scmp.lt.s32.totalorder %s423_s0, %s423_s0 }
  0x30   :  { %p430_p8 = por %p429_p7, %p428_p6 }
  0x32   :  { %p431_p9 = pnand %p430_p8, %p424_p5 }
  0x34   :  { %434 = shalt.err (!%p431_p9)
}
  0x35   :  { %52 = dma.hbm_to_vmem [thread:$0]  %s630_s3, 256, %s47_s25, [#allocation6], %s488_s7, %s488_s7, %s489_s8  }
  0x36   :  { %s435_s17 = scalar_lea.hbm %s631_s4, 256 }
  0x37   :  { %p436_p10 = scmp.ne.s32.totalorder %s631_s4, %s435_s17  ;;  %p439_p11 = scmp.lt.u32.totalorder %s435_s17, %s631_s4 }
  0x39   :  { %p441_p12 = pnand %p439_p11, %p436_p10 }
  0x3b   :  { %444 = shalt.err (!%p441_p12)
}
  0x3c   :  { %s445_s23 = scalar_lea.vmem %s563_s27, 256  ;;  %p450_p0 = scmp.lt.s32.totalorder %s563_s27, %s563_s27 }
  0x3d   :  { %p446_p13 = scmp.ne.s32.totalorder %s563_s27, %s445_s23  ;;  %p451_p1 = scmp.lt.s32.totalorder %s445_s23, %s445_s23 }
  0x3f   :  { %p452_p2 = por %p451_p1, %p450_p0 }
  0x41   :  { %p453_p3 = pnand %p452_p2, %p446_p13 }
  0x43   :  { %456 = shalt.err (!%p453_p3)
}
  0x44   :  { %64 = dma.hbm_to_vmem [thread:$0]  %s631_s4, 256, %s563_s27, [#allocation9], %s488_s7, %s488_s7, %s489_s8  }
  0x45   :  { %479 = dma.done.wait [#allocation3], 256  }
  0x46   :  { %480 = vsyncadd [#allocation3], 4294967040 }
  0x47   :  { %481 = dma.done.wait [#allocation6], 512  }
  0x48   :  { %482 = vsyncadd [#allocation6], 4294966784 }
  0x49   :  { %483 = dma.done.wait [#allocation9], 256  }
  0x4a   :  { %484 = vsyncadd [#allocation9], 4294967040  ;;  %v495_v0 = vmov 0.0   ;;  %vm496_vm0 = vmmov 0   ;;  %v363_v1 = vld [vmem:[#allocation5] sm:$0xff]   ;;  %v364_v2 = vld [vmem:[#allocation5 + $0x8] sm:$0xff]  }
  0x4b   :  { %328 = vmatprep.subr.bf16.mxu0 %v495_v0  ;;  %332 = vmatprep.mubr.msk.bf16.mxu0 %vm496_vm0, %v495_v0  ;;  %v80_v3 = vld [vmem:[#allocation2] sm:$0xff]  ;;  %v81_v4 = vld [vmem:[#allocation2 + $0x8] sm:$0xff]  ;;  %v365_v7 = vld [vmem:[#allocation8] sm:$0xff]   ;;  %vm108_vm1 = vcmask 261120   ;;  %vm286_vm2 = vcmask 523264  }
  0x4c   :  { %336 = vmatprep.subr.bf16.mxu1 %v495_v0  ;;  %340 = vmatprep.mubr.msk.bf16.mxu1 %vm496_vm0, %v495_v0  ;;  %v82_v5 = vmax.f32 %v80_v3, 0.0  ;;  %v83_v6 = vmax.f32 %v81_v4, 0.0  ;;  %v366_v9 = vld [vmem:[#allocation7] sm:$0xff]   ;;  %v367_v10 = vld [vmem:[#allocation8 + $0x8] sm:$0xff]   ;;  %v368_v11 = vld [vmem:[#allocation7 + $0x8] sm:$0xff]   ;;  %v160_v12 = vpack.c.bf16 %v81_v4, %v80_v3 }
  0x4d   :  { %329 = vmatpush3.bf16.msra.mxu0 %v363_v1  ;;  %337 = vmatpush3.bf16.msra.mxu1 %v365_v7  ;;  %v308_v13 = vld [vmem:[%s629_s2] ss:$0 sm:$0xff]  ;;  %s497_s2 = smov [#allocation10]  }
  0x4e   :  { %330 = vmatprep.subr.bf16.mxu0 %v495_v0  ;;  %v84_v8 = vpack.c.bf16 %v83_v6, %v82_v5  ;;  %338 = vmatprep.subr.bf16.mxu1 %v495_v0  ;;  %v318_v28 = vld [vmem:[%s632_s5] ss:$0 sm:$0xff]  ;;  %s294_s26 = sshll.u32 %s497_s2, 4  ;;  %s295_s26 = int_to_ptr.vmem [resolvable:$true] %s294_s26 }
  0x4f   :  { %s457_s27 = scalar_lea.vmem %s295_s26, 256  ;;  %p462_p5 = scmp.lt.s32.totalorder %s295_s26, %s295_s26 }
  0x50   :  { %p458_p4 = scmp.ne.s32.totalorder %s295_s26, %s457_s27  ;;  %p463_p6 = scmp.lt.s32.totalorder %s457_s27, %s457_s27 }
  0x51   :  { %331 = vmatpush3.bf16.msra.mxu0 %v364_v2  ;;  %339 = vmatpush3.bf16.msra.mxu1 %v367_v10 }
  0x52   :  { %344 = vmatprep.subr.bf16.mxu0 %v495_v0  ;;  %p464_p7 = por %p463_p6, %p462_p5 }
  0x54   :  { %333 = vmatmul.mubr.msk.bf16.vlgmr.msra.gmra.mrb[0].mxu0 %vm108_vm1, %v84_v8  ;;  %341 = vmatmul.mubr.msk.bf16.vlgmr.msra.gmra.mrb[0].mxu1 %vm108_vm1, %v160_v12  ;;  %p465_p8 = pnand %p464_p7, %p458_p4 }
  0x55   :  { %348 = vmatprep.mubr.msk.bf16.mxu0 %vm496_vm0, %v495_v0  ;;  %345 = vmatpush3.bf16.msra.mxu0 %v366_v9 }
  0x56   :  { %346 = vmatprep.subr.bf16.mxu0 %v495_v0 }
  0x59   :  { %347 = vmatpush3.bf16.msra.mxu0 %v368_v11 }
 0x127   :  { %v146_v14 = vpop.f32.mrb[0].mxu0  ;;  %v214_v23 = vpop.f32.mrb[0].mxu1 }
 0x128   :  { %v147_v15 = vadd.f32 %v308_v13, %v146_v14  ;;  %v334_v16 = vpop.f32.mrb[1].mxu0  ;;  %v342_v24 = vpop.f32.mrb[1].mxu1 }
 0x129   :  { %v149_v17 = vpop.f32.mrb[2].mxu0  ;;  %v217_v25 = vpop.f32.mrb[2].mxu1 }
 0x12a   :  { %v150_v18 = vadd.f32 %v308_v13, %v149_v17  ;;  %v335_v19 = vpop.f32.mrb[3].mxu0  ;;  %v153_v20 = vmax.f32 %v147_v15, 0.0  ;;  %v343_v26 = vpop.f32.mrb[3].mxu1 }
 0x12c   :  { %v154_v21 = vmax.f32 %v150_v18, 0.0 }
 0x12e   :  { %v155_v22 = vpack.c.bf16 %v154_v21, %v153_v20 }
 0x130   :  { %349 = vmatmul.mubr.msk.bf16.vlgmr.msra.gmra.mrb[4].mxu0 %vm108_vm1, %v155_v22 }
 0x203   :  { %v270_v27 = vpop.f32.mrb[4].mxu0 }
 0x204   :  { %v271_v29 = vadd.f32 %v270_v27, %v214_v23  ;;  %v350_v30 = vpop.f32.mrb[5].mxu0 }
 0x205   :  { %v273_v31 = vpop.f32.mrb[6].mxu0 }
 0x206   :  { %v284_v32 = vadd.f32 %v318_v28, %v271_v29  ;;  %v274_v33 = vadd.f32 %v273_v31, %v217_v25  ;;  %v351_v34 = vpop.f32.mrb[7].mxu0 }
 0x208   :  { %v285_v35 = vadd.f32 %v318_v28, %v274_v33  ;;  %287 = vst.msk [vmem:[#allocation10] sm:$0xff] %vm286_vm2, %v284_v32 }
 0x20a   :  { %288 = vst.msk [vmem:[#allocation10 + $0x8] sm:$0xff] %vm286_vm2, %v285_v35 }
 0x20b   :  { %468 = shalt.err (!%p465_p8)
}
 0x20c   :  { %s469_s29 = scalar_lea.hbm %s633_s6, 256 }
 0x20d   :  { %p470_p9 = scmp.ne.s32.totalorder %s633_s6, %s469_s29  ;;  %p473_p10 = scmp.lt.u32.totalorder %s469_s29, %s633_s6 }
 0x20f   :  { %p475_p11 = pnand %p473_p10, %p470_p9 }
 0x211   :  { %478 = shalt.err (!%p475_p11)
}
 0x212   :  { %300 = dma.vmem_to_hbm [thread:$0]  %s295_s26, 256, %s633_s6, [#allocation4], %s491_s1, %s491_s1, %s492_s21  }
 0x213   :  { %485 = dma.done.wait [#allocation4], 256  }
 0x214   :  { %486 = vsyncadd [#allocation4], 4294967040 }
 0x215   :  { %304 = vsyncpa [#allocation3], 1 }
 0x216   :  { %305 = vsyncpa [#allocation6], 1 }
 0x217   :  { %306 = vsyncpa [#allocation9], 1 }
 0x218   :  { %307 = vsyncpa [#allocation4], 1 }

// kernel: tpu_custom_call.1
= control target key start
LH: loop header
LB: loop body
LE: loop exit
PB: predicated region body
PF: predicated region fallthrough
CT: control target
= control target key end

     0   :  { %11 = vsyncpa [#allocation3], 0  ;;  %s627_s0 = inlined_call_operand.hbm [shape: f32[16,32], index: 0, kind: input, shape index: {}]   ;;  %s628_s1 = inlined_call_operand.hbm [shape: bf16[32,32], index: 1, kind: input, shape index: {}]   ;;  %s629_s2 = inlined_call_operand.vmem [shape: f32[1,32], index: 2, kind: input, shape index: {}]   ;;  %s630_s3 = inlined_call_operand.hbm [shape: bf16[32,64], index: 3, kind: input, shape index: {}]   ;;  %s631_s4 = inlined_call_operand.hbm [shape: bf16[32,64], index: 4, kind: input, shape index: {}]   ;;  %s632_s5 = inlined_call_operand.vmem [shape: f32[1,64], index: 5, kind: input, shape index: {}]   ;;  %s633_s6 = inlined_call_operand.hbm [shape: f32[16,64], index: 6, kind: output, shape index: {}]  }
   0x1   :  { %12 = vsyncpa [#allocation6], 0 }
   0x2   :  { %13 = vsyncpa [#allocation9], 0 }
   0x3   :  { %14 = vsyncpa [#allocation4], 0  ;;  %s487_s21 = smov [#allocation5]   ;;  %s369_s25 = scalar_lea.hbm %s628_s1, 256 }
   0x4   :  { %s32_s22 = sshll.u32 %s487_s21, 4  ;;  %p370_p0 = scmp.ne.s32.totalorder %s628_s1, %s369_s25  ;;  %s33_s22 = int_to_ptr.vmem [resolvable:$true] %s32_s22 }
   0x5   :  { %p373_p1 = scmp.lt.u32.totalorder %s369_s25, %s628_s1 }
   0x7   :  { %p375_p2 = pnand %p373_p1, %p370_p0 }
   0x9   :  { %378 = shalt.err (!%p375_p2)
}
   0xa   :  { %s379_s30 = scalar_lea.vmem %s33_s22, 256  ;;  %p384_p4 = scmp.lt.s32.totalorder %s33_s22, %s33_s22 }
   0xb   :  { %p380_p3 = scmp.ne.s32.totalorder %s33_s22, %s379_s30  ;;  %p385_p5 = scmp.lt.s32.totalorder %s379_s30, %s379_s30 }
   0xd   :  { %p386_p6 = por %p385_p5, %p384_p4 }
   0xf   :  { %p387_p7 = pnand %p386_p6, %p380_p3 }
  0x11   :  { %390 = shalt.err (!%p387_p7)
}
  0x12   :  { %s488_s7 = smov 64   ;;  %s489_s8 = smov 4  }
  0x13   :  { %38 = dma.hbm_to_vmem [thread:$0]  %s628_s1, 256, %s33_s22, [#allocation6], %s488_s7, %s488_s7, %s489_s8  }
  0x14   :  { %s490_s11 = smov [#allocation2]   ;;  %s391_s15 = scalar_lea.hbm %s627_s0, 256 }
  0x15   :  { %s20_s12 = sshll.u32 %s490_s11, 4  ;;  %p392_p8 = scmp.ne.s32.totalorder %s627_s0, %s391_s15  ;;  %s21_s12 = int_to_ptr.vmem [resolvable:$true] %s20_s12 }
  0x16   :  { %p395_p9 = scmp.lt.u32.totalorder %s391_s15, %s627_s0 }
  0x18   :  { %p397_p10 = pnand %p395_p9, %p392_p8 }
  0x1a   :  { %400 = shalt.err (!%p397_p10)
}
  0x1b   :  { %s401_s20 = scalar_lea.vmem %s21_s12, 256  ;;  %p406_p12 = scmp.lt.s32.totalorder %s21_s12, %s21_s12 }
  0x1c   :  { %p402_p11 = scmp.ne.s32.totalorder %s21_s12, %s401_s20  ;;  %p407_p13 = scmp.lt.s32.totalorder %s401_s20, %s401_s20 }
  0x1e   :  { %p408_p0 = por %p407_p13, %p406_p12 }
  0x20   :  { %p409_p1 = pnand %p408_p0, %p402_p11 }
  0x22   :  { %412 = shalt.err (!%p409_p1)
}
  0x23   :  { %s491_s1 = smov 128   ;;  %s492_s21 = smov 8  }
  0x24   :  { %26 = dma.hbm_to_vmem [thread:$0]  %s627_s0, 256, %s21_s12, [#allocation3], %s491_s1, %s491_s1, %s492_s21  }
  0x25   :  { %s493_s24 = smov [#allocation7]   ;;  %s494_s26 = smov [#allocation8]  }
  0x26   :  { %s46_s25 = sshll.u32 %s493_s24, 4  ;;  %s58_s27 = sshll.u32 %s494_s26, 4  ;;  %s47_s25 = int_to_ptr.vmem [resolvable:$true] %s46_s25  ;;  %s563_s27 = int_to_ptr.vmem [resolvable:$true] %s58_s27 }
  0x27   :  { %s413_s30 = scalar_lea.hbm %s630_s3, 256 }
  0x28   :  { %p414_p2 = scmp.ne.s32.totalorder %s630_s3, %s413_s30  ;;  %p417_p3 = scmp.lt.u32.totalorder %s413_s30, %s630_s3 }
  0x2a   :  { %p419_p4 = pnand %p417_p3, %p414_p2 }
  0x2c   :  { %422 = shalt.err (!%p419_p4)
}
  0x2d   :  { %s423_s0 = scalar_lea.vmem %s47_s25, 256  ;;  %p428_p6 = scmp.lt.s32.totalorder %s47_s25, %s47_s25 }
  0x2e   :  { %p424_p5 = scmp.ne.s32.totalorder %s47_s25, %s423_s0  ;;  %p429_p7 = scmp.lt.s32.totalorder %s423_s0, %s423_s0 }
  0x30   :  { %p430_p8 = por %p429_p7, %p428_p6 }
  0x32   :  { %p431_p9 = pnand %p430_p8, %p424_p5 }
  0x34   :  { %434 = shalt.err (!%p431_p9)
}
  0x35   :  { %52 = dma.hbm_to_vmem [thread:$0]  %s630_s3, 256, %s47_s25, [#allocation6], %s488_s7, %s488_s7, %s489_s8  }
  0x36   :  { %s435_s17 = scalar_lea.hbm %s631_s4, 256 }
  0x37   :  { %p436_p10 = scmp.ne.s32.totalorder %s631_s4, %s435_s17  ;;  %p439_p11 = scmp.lt.u32.totalorder %s435_s17, %s631_s4 }
  0x39   :  { %p441_p12 = pnand %p439_p11, %p436_p10 }
  0x3b   :  { %444 = shalt.err (!%p441_p12)
}
  0x3c   :  { %s445_s23 = scalar_lea.vmem %s563_s27, 256  ;;  %p450_p0 = scmp.lt.s32.totalorder %s563_s27, %s563_s27 }
  0x3d   :  { %p446_p13 = scmp.ne.s32.totalorder %s563_s27, %s445_s23  ;;  %p451_p1 = scmp.lt.s32.totalorder %s445_s23, %s445_s23 }
  0x3f   :  { %p452_p2 = por %p451_p1, %p450_p0 }
  0x41   :  { %p453_p3 = pnand %p452_p2, %p446_p13 }
  0x43   :  { %456 = shalt.err (!%p453_p3)
}
  0x44   :  { %64 = dma.hbm_to_vmem [thread:$0]  %s631_s4, 256, %s563_s27, [#allocation9], %s488_s7, %s488_s7, %s489_s8  }
  0x45   :  { %479 = dma.done.wait [#allocation3], 256  }
  0x46   :  { %480 = vsyncadd [#allocation3], 4294967040 }
  0x47   :  { %481 = dma.done.wait [#allocation6], 512  }
  0x48   :  { %482 = vsyncadd [#allocation6], 4294966784 }
  0x49   :  { %483 = dma.done.wait [#allocation9], 256  }
  0x4a   :  { %484 = vsyncadd [#allocation9], 4294967040  ;;  %v495_v0 = vmov 0.0   ;;  %vm496_vm0 = vmmov 0   ;;  %v363_v1 = vld [vmem:[#allocation5] sm:$0xff]   ;;  %v364_v2 = vld [vmem:[#allocation5 + $0x8] sm:$0xff]  }
  0x4b   :  { %328 = vmatprep.subr.bf16.mxu0 %v495_v0  ;;  %332 = vmatprep.mubr.msk.bf16.mxu0 %vm496_vm0, %v495_v0  ;;  %v80_v3 = vld [vmem:[#allocation2] sm:$0xff]  ;;  %v81_v4 = vld [vmem:[#allocation2 + $0x8] sm:$0xff]  ;;  %v365_v7 = vld [vmem:[#allocation8] sm:$0xff]   ;;  %vm108_vm1 = vcmask 261120   ;;  %vm286_vm2 = vcmask 523264  }
  0x4c   :  { %336 = vmatprep.subr.bf16.mxu1 %v495_v0  ;;  %340 = vmatprep.mubr.msk.bf16.mxu1 %vm496_vm0, %v495_v0  ;;  %v82_v5 = vmax.f32 %v80_v3, 0.0  ;;  %v83_v6 = vmax.f32 %v81_v4, 0.0  ;;  %v366_v9 = vld [vmem:[#allocation7] sm:$0xff]   ;;  %v367_v10 = vld [vmem:[#allocation8 + $0x8] sm:$0xff]   ;;  %v368_v11 = vld [vmem:[#allocation7 + $0x8] sm:$0xff]   ;;  %v160_v12 = vpack.c.bf16 %v81_v4, %v80_v3 }
  0x4d   :  { %329 = vmatpush3.bf16.msra.mxu0 %v363_v1  ;;  %337 = vmatpush3.bf16.msra.mxu1 %v365_v7  ;;  %v308_v13 = vld [vmem:[%s629_s2] ss:$0 sm:$0xff]  ;;  %s497_s2 = smov [#allocation10]  }
  0x4e   :  { %330 = vmatprep.subr.bf16.mxu0 %v495_v0  ;;  %v84_v8 = vpack.c.bf16 %v83_v6, %v82_v5  ;;  %338 = vmatprep.subr.bf16.mxu1 %v495_v0  ;;  %v318_v28 = vld [vmem:[%s632_s5] ss:$0 sm:$0xff]  ;;  %s294_s26 = sshll.u32 %s497_s2, 4  ;;  %s295_s26 = int_to_ptr.vmem [resolvable:$true] %s294_s26 }
  0x4f   :  { %s457_s27 = scalar_lea.vmem %s295_s26, 256  ;;  %p462_p5 = scmp.lt.s32.totalorder %s295_s26, %s295_s26 }
  0x50   :  { %p458_p4 = scmp.ne.s32.totalorder %s295_s26, %s457_s27  ;;  %p463_p6 = scmp.lt.s32.totalorder %s457_s27, %s457_s27 }
  0x51   :  { %331 = vmatpush3.bf16.msra.mxu0 %v364_v2  ;;  %339 = vmatpush3.bf16.msra.mxu1 %v367_v10 }
  0x52   :  { %344 = vmatprep.subr.bf16.mxu0 %v495_v0  ;;  %p464_p7 = por %p463_p6, %p462_p5 }
  0x54   :  { %333 = vmatmul.mubr.msk.bf16.vlgmr.msra.gmra.mrb[0].mxu0 %vm108_vm1, %v84_v8  ;;  %341 = vmatmul.mubr.msk.bf16.vlgmr.msra.gmra.mrb[0].mxu1 %vm108_vm1, %v160_v12  ;;  %p465_p8 = pnand %p464_p7, %p458_p4 }
  0x55   :  { %348 = vmatprep.mubr.msk.bf16.mxu0 %vm496_vm0, %v495_v0  ;;  %345 = vmatpush3.bf16.msra.mxu0 %v366_v9 }
  0x56   :  { %346 = vmatprep.subr.bf16.mxu0 %v495_v0 }
  0x59   :  { %347 = vmatpush3.bf16.msra.mxu0 %v368_v11 }
 0x127   :  { %v146_v14 = vpop.f32.mrb[0].mxu0  ;;  %v214_v23 = vpop.f32.mrb[0].mxu1 }
 0x128   :  { %v147_v15 = vadd.f32 %v308_v13, %v146_v14  ;;  %v334_v16 = vpop.f32.mrb[1].mxu0  ;;  %v342_v24 = vpop.f32.mrb[1].mxu1 }
 0x129   :  { %v149_v17 = vpop.f32.mrb[2].mxu0  ;;  %v217_v25 = vpop.f32.mrb[2].mxu1 }
 0x12a   :  { %v150_v18 = vadd.f32 %v308_v13, %v149_v17  ;;  %v335_v19 = vpop.f32.mrb[3].mxu0  ;;  %v153_v20 = vmax.f32 %v147_v15, 0.0  ;;  %v343_v26 = vpop.f32.mrb[3].mxu1 }
 0x12c   :  { %v154_v21 = vmax.f32 %v150_v18, 0.0 }
 0x12e   :  { %v155_v22 = vpack.c.bf16 %v154_v21, %v153_v20 }
 0x130   :  { %349 = vmatmul.mubr.msk.bf16.vlgmr.msra.gmra.mrb[4].mxu0 %vm108_vm1, %v155_v22 }
 0x203   :  { %v270_v27 = vpop.f32.mrb[4].mxu0 }
 0x204   :  { %v271_v29 = vadd.f32 %v270_v27, %v214_v23  ;;  %v350_v30 = vpop.f32.mrb[5].mxu0 }
 0x205   :  { %v273_v31 = vpop.f32.mrb[6].mxu0 }
 0x206   :  { %v284_v32 = vadd.f32 %v318_v28, %v271_v29  ;;  %v274_v33 = vadd.f32 %v273_v31, %v217_v25  ;;  %v351_v34 = vpop.f32.mrb[7].mxu0 }
 0x208   :  { %v285_v35 = vadd.f32 %v318_v28, %v274_v33  ;;  %287 = vst.msk [vmem:[#allocation10] sm:$0xff] %vm286_vm2, %v284_v32 }
 0x20a   :  { %288 = vst.msk [vmem:[#allocation10 + $0x8] sm:$0xff] %vm286_vm2, %v285_v35 }
 0x20b   :  { %468 = shalt.err (!%p465_p8)
}
 0x20c   :  { %s469_s29 = scalar_lea.hbm %s633_s6, 256 }
 0x20d   :  { %p470_p9 = scmp.ne.s32.totalorder %s633_s6, %s469_s29  ;;  %p473_p10 = scmp.lt.u32.totalorder %s469_s29, %s633_s6 }
 0x20f   :  { %p475_p11 = pnand %p473_p10, %p470_p9 }
 0x211   :  { %478 = shalt.err (!%p475_p11)
}
 0x212   :  { %300 = dma.vmem_to_hbm [thread:$0]  %s295_s26, 256, %s633_s6, [#allocation4], %s491_s1, %s491_s1, %s492_s21  }
 0x213   :  { %485 = dma.done.wait [#allocation4], 256  }
 0x214   :  { %486 = vsyncadd [#allocation4], 4294967040 }
 0x215   :  { %304 = vsyncpa [#allocation3], 1 }
 0x216   :  { %305 = vsyncpa [#allocation6], 1 }
 0x217   :  { %306 = vsyncpa [#allocation9], 1 }
 0x218   :  { %307 = vsyncpa [#allocation4], 1 }

</bundles_post_ra>
